<compile_context>
chip_gen: v5e
topology: v5e:2x2
jax: 0.10.0
libtpu: 0.0.40
codegen_flags: <defaults>
</compile_context>

<pallas_src>
import jax
import jax.numpy as jnp
from jax.experimental import pallas as pl
from jax.experimental.pallas import tpu as pltpu

LN_EPS = 1e-5  # PyTorch nn.LayerNorm default


def _layernorm_fused(h, gamma, beta):
    """One-pass LayerNorm: s1 = sum(h), s2 = sum(h*h); biased variance
    (matches nn.LayerNorm), clamped at 0 for numerical safety."""
    inv_n = 1.0 / h.shape[-1]
    s1 = jnp.sum(h, axis=-1, keepdims=True)
    s2 = jnp.sum(h * h, axis=-1, keepdims=True)
    mu = s1 * inv_n
    var = jnp.maximum(s2 * inv_n - mu * mu, 0.0)
    return (h - mu) * jax.lax.rsqrt(var + LN_EPS) * gamma + beta


def actor_kernel(x_ref,
                 w1_ref, v1_ref,       # v1 = [bias1; gamma1; beta1]  (3, fc1)
                 w2_ref, v2_ref,       # v2 = [bias2; gamma2; beta2]  (3, fc2)
                 w3_ref, b3_ref,
                 o_ref):
    x = x_ref[...]
    if x.dtype != jnp.float32:          # trace-time branch; no-op cast avoided
        x = x.astype(jnp.float32)

    # fc1 -> LayerNorm -> ReLU
    h = jnp.dot(x, w1_ref[...], preferred_element_type=jnp.float32) + v1_ref[0:1, :]
    h = _layernorm_fused(h, v1_ref[1:2, :], v1_ref[2:3, :])
    h = jnp.maximum(h, 0.0)

    # fc2 -> LayerNorm -> ReLU
    h = jnp.dot(h, w2_ref[...], preferred_element_type=jnp.float32) + v2_ref[0:1, :]
    h = _layernorm_fused(h, v2_ref[1:2, :], v2_ref[2:3, :])
    h = jnp.maximum(h, 0.0)

    # mu head -> tanh
    a = jnp.dot(h, w3_ref[...], preferred_element_type=jnp.float32) + b3_ref[...]
    o_ref[...] = jnp.tanh(a).astype(o_ref.dtype)


def actor_forward(state, params, *, batch_tile=256):
    """Whole Actor MLP in one pallas_call.

    A single 'parallel' grid axis tiles the batch dimension (rows are
    independent: matmul / LayerNorm / activations are all row-wise, so padded
    edge rows are harmless and discarded on store).  Weights and the packed
    per-layer vectors are full-array blocks with constant index maps, so they
    stay resident in VMEM across grid steps.
    """
    w1, v1, w2, v2, w3, b3 = params
    batch, input_dims = state.shape
    n_actions = w3.shape[1]

    # Batch tile: full batch as one block for small batches, otherwise a
    # multiple of 8 (sublane rule) so v7x can shard rows over both TCs.
    if batch <= batch_tile:
        tb = batch
    else:
        tb = batch_tile
        assert tb % 8 == 0, "batch_tile must be a multiple of 8"
    grid = (pl.cdiv(batch, tb),)

    def const_spec(shape):
        return pl.BlockSpec(shape, lambda i: (0, 0), memory_space=pltpu.VMEM)

    in_specs = [
        pl.BlockSpec((tb, input_dims), lambda i: (i, 0), memory_space=pltpu.VMEM),
        const_spec(w1.shape), const_spec(v1.shape),
        const_spec(w2.shape), const_spec(v2.shape),
        const_spec(w3.shape), const_spec(b3.shape),
    ]
    out_specs = pl.BlockSpec((tb, n_actions), lambda i: (i, 0),
                             memory_space=pltpu.VMEM)

    return pl.pallas_call(
        actor_kernel,
        out_shape=jax.ShapeDtypeStruct((batch, n_actions), jnp.float32),
        grid=grid,
        in_specs=in_specs,
        out_specs=out_specs,
        compiler_params=pltpu.CompilerParams(
            dimension_semantics=("parallel",)),
    )(state, w1, v1, w2, v2, w3, b3)


def init_actor_params(key, input_dims, fc1_dims, fc2_dims, n_actions):
    """Mirrors the PyTorch module's __init__ (including its 1/sqrt(out_dim)
    bound quirk — weight.size()[0] is the OUT dim in nn.Linear):
       fc1, fc2 ~ U(-1/sqrt(fc_dims), 1/sqrt(fc_dims)) for both W and b
       mu       ~ U(-0.003, 0.003)
       LayerNorm gamma=1, beta=0.
    Per-layer vectors are packed: v = stack([bias, gamma, beta]) -> (3, fc).
    """
    ks = jax.random.split(key, 6)
    f1 = 1.0 / jnp.sqrt(fc1_dims)
    f2 = 1.0 / jnp.sqrt(fc2_dims)
    f3 = 0.003

    w1 = jax.random.uniform(ks[0], (input_dims, fc1_dims), jnp.float32, -f1, f1)
    b1 = jax.random.uniform(ks[1], (fc1_dims,), jnp.float32, -f1, f1)
    v1 = jnp.stack([b1, jnp.ones((fc1_dims,), jnp.float32),
                    jnp.zeros((fc1_dims,), jnp.float32)], axis=0)  # (3, fc1)

    w2 = jax.random.uniform(ks[2], (fc1_dims, fc2_dims), jnp.float32, -f2, f2)
    b2 = jax.random.uniform(ks[3], (fc2_dims,), jnp.float32, -f2, f2)
    v2 = jnp.stack([b2, jnp.ones((fc2_dims,), jnp.float32),
                    jnp.zeros((fc2_dims,), jnp.float32)], axis=0)  # (3, fc2)

    w3 = jax.random.uniform(ks[4], (fc2_dims, n_actions), jnp.float32, -f3, f3)
    b3 = jax.random.uniform(ks[5], (1, n_actions), jnp.float32, -f3, f3)

    return (w1, v1, w2, v2, w3, b3)


def actor_reference(state, params):
    """Pure-JAX reference (centered-variance LayerNorm, as in PyTorch)."""
    w1, v1, w2, v2, w3, b3 = params

    def ln(h, gamma, beta):
        mu = jnp.mean(h, axis=-1, keepdims=True)
        var = jnp.mean((h - mu) ** 2, axis=-1, keepdims=True)
        return (h - mu) * jax.lax.rsqrt(var + LN_EPS) * gamma + beta

    h = state @ w1 + v1[0]
    h = jnp.maximum(ln(h, v1[1], v1[2]), 0.0)
    h = h @ w2 + v2[0]
    h = jnp.maximum(ln(h, v2[1], v2[2]), 0.0)
    return jnp.tanh(h @ w3 + b3)


if __name__ == "__main__":
    input_dims, fc1_dims, fc2_dims, n_actions = 16, 32, 32, 2

    key = jax.random.PRNGKey(0)
    k_params, k_small, k_big = jax.random.split(key, 3)
    params = init_actor_params(k_params, input_dims, fc1_dims, fc2_dims, n_actions)

    # Small batch (single full-batch block).
    state_small = jax.random.normal(k_small, (2, input_dims), jnp.float32)
    out_small = jax.block_until_ready(actor_forward(state_small, params))
    ref_small = actor_reference(state_small, params)
    assert out_small.shape == (2, n_actions)
    assert jnp.allclose(out_small, ref_small, atol=1e-5, rtol=1e-5), "small-batch mismatch"

    # Replay-buffer-sized batch: exercises the tiled 'parallel' batch grid.
    state_big = jax.random.normal(k_big, (512, input_dims), jnp.float32)
    out_big = jax.block_until_ready(actor_forward(state_big, params))
    ref_big = actor_reference(state_big, params)
    assert out_big.shape == (512, n_actions)
    assert jnp.allclose(out_big, ref_big, atol=1e-5, rtol=1e-5), "big-batch mismatch"

    print("KERNEL_OK")
</pallas_src>

<mosaic_0001>
module attributes {stable_mosaic.version = 11 : i64} {
  func.func @actor_kernel(%arg0: i32, %arg1: memref<2x16xf32, #tpu.memory_space<vmem>>, %arg2: memref<16x32xf32, #tpu.memory_space<vmem>>, %arg3: memref<3x32xf32, #tpu.memory_space<vmem>>, %arg4: memref<32x32xf32, #tpu.memory_space<vmem>>, %arg5: memref<3x32xf32, #tpu.memory_space<vmem>>, %arg6: memref<32x2xf32, #tpu.memory_space<vmem>>, %arg7: memref<1x2xf32, #tpu.memory_space<vmem>>, %arg8: memref<2x2xf32, #tpu.memory_space<vmem>>) attributes {dimension_semantics = [#tpu.dimension_semantics<parallel>], iteration_bounds = array<i64: 1>, scalar_prefetch = 0 : i64, scratch_operands = 0 : i64, tpu.core_type = #tpu.core_type<tc>, window_params = [{transform_indices = @transform_0, window_bounds = array<i64: 2, 16>}, {pipeline_mode = #tpu.pipeline_mode<synchronous>, transform_indices = @transform_1, window_bounds = array<i64: 16, 32>}, {pipeline_mode = #tpu.pipeline_mode<synchronous>, transform_indices = @transform_2, window_bounds = array<i64: 3, 32>}, {pipeline_mode = #tpu.pipeline_mode<synchronous>, transform_indices = @transform_3, window_bounds = array<i64: 32, 32>}, {pipeline_mode = #tpu.pipeline_mode<synchronous>, transform_indices = @transform_4, window_bounds = array<i64: 3, 32>}, {pipeline_mode = #tpu.pipeline_mode<synchronous>, transform_indices = @transform_5, window_bounds = array<i64: 32, 2>}, {pipeline_mode = #tpu.pipeline_mode<synchronous>, transform_indices = @transform_6, window_bounds = array<i64: 1, 2>}, {transform_indices = @transform_7, window_bounds = array<i64: 2, 2>}]} {
    %c0 = arith.constant 0 : index
    %c0_0 = arith.constant 0 : index
    %0 = vector.load %arg1[%c0, %c0_0] : memref<2x16xf32, #tpu.memory_space<vmem>>, vector<2x16xf32>
    %c0_1 = arith.constant 0 : index
    %c0_2 = arith.constant 0 : index
    %1 = vector.load %arg2[%c0_1, %c0_2] : memref<16x32xf32, #tpu.memory_space<vmem>>, vector<16x32xf32>
    %cst = arith.constant dense<0.000000e+00> : vector<2x32xf32>
    %2 = tpu.matmul %0, %1, %cst {dimension_numbers = #tpu.dot_dimension_numbers<[1], [0], [0], [1], [0, 0, 1, 1], [], []>} : vector<2x16xf32>, vector<16x32xf32>, vector<2x32xf32> -> vector<2x32xf32>
    %c0_3 = arith.constant 0 : index
    %c0_4 = arith.constant 0 : index
    %3 = vector.load %arg3[%c0_3, %c0_4] : memref<3x32xf32, #tpu.memory_space<vmem>>, vector<1x32xf32>
    %4 = vector.broadcast %3 : vector<1x32xf32> to vector<2x32xf32>
    %5 = arith.addf %2, %4 : vector<2x32xf32>
    %c1 = arith.constant 1 : index
    %c0_5 = arith.constant 0 : index
    %6 = vector.load %arg3[%c1, %c0_5] : memref<3x32xf32, #tpu.memory_space<vmem>>, vector<1x32xf32>
    %c2 = arith.constant 2 : index
    %c0_6 = arith.constant 0 : index
    %7 = vector.load %arg3[%c2, %c0_6] : memref<3x32xf32, #tpu.memory_space<vmem>>, vector<1x32xf32>
    %cst_7 = arith.constant dense<0.000000e+00> : vector<2xf32>
    %8 = vector.multi_reduction <add>, %5, %cst_7 [1] : vector<2x32xf32> to vector<2xf32>
    %9 = vector.shape_cast %8 : vector<2xf32> to vector<2x1xf32>
    %10 = arith.mulf %5, %5 : vector<2x32xf32>
    %cst_8 = arith.constant dense<0.000000e+00> : vector<2xf32>
    %11 = vector.multi_reduction <add>, %10, %cst_8 [1] : vector<2x32xf32> to vector<2xf32>
    %12 = vector.shape_cast %11 : vector<2xf32> to vector<2x1xf32>
    %cst_9 = arith.constant 3.125000e-02 : f32
    %13 = vector.broadcast %cst_9 : f32 to vector<2x1xf32>
    %14 = arith.mulf %9, %13 : vector<2x1xf32>
    %cst_10 = arith.constant 3.125000e-02 : f32
    %15 = vector.broadcast %cst_10 : f32 to vector<2x1xf32>
    %16 = arith.mulf %12, %15 : vector<2x1xf32>
    %17 = arith.mulf %14, %14 : vector<2x1xf32>
    %18 = arith.subf %16, %17 : vector<2x1xf32>
    %cst_11 = arith.constant 0.000000e+00 : f32
    %19 = vector.broadcast %cst_11 : f32 to vector<2x1xf32>
    %20 = arith.maximumf %18, %19 : vector<2x1xf32>
    %21 = vector.broadcast %14 : vector<2x1xf32> to vector<2x32xf32>
    %22 = arith.subf %5, %21 : vector<2x32xf32>
    %cst_12 = arith.constant 9.99999974E-6 : f32
    %23 = vector.broadcast %cst_12 : f32 to vector<2x1xf32>
    %24 = arith.addf %20, %23 : vector<2x1xf32>
    %25 = math.rsqrt %24 : vector<2x1xf32>
    %26 = vector.broadcast %25 : vector<2x1xf32> to vector<2x32xf32>
    %27 = arith.mulf %22, %26 : vector<2x32xf32>
    %28 = vector.broadcast %6 : vector<1x32xf32> to vector<2x32xf32>
    %29 = arith.mulf %27, %28 : vector<2x32xf32>
    %30 = vector.broadcast %7 : vector<1x32xf32> to vector<2x32xf32>
    %31 = arith.addf %29, %30 : vector<2x32xf32>
    %cst_13 = arith.constant 0.000000e+00 : f32
    %32 = vector.broadcast %cst_13 : f32 to vector<2x32xf32>
    %33 = arith.maximumf %31, %32 : vector<2x32xf32>
    %c0_14 = arith.constant 0 : index
    %c0_15 = arith.constant 0 : index
    %34 = vector.load %arg4[%c0_14, %c0_15] : memref<32x32xf32, #tpu.memory_space<vmem>>, vector<32x32xf32>
    %cst_16 = arith.constant dense<0.000000e+00> : vector<2x32xf32>
    %35 = tpu.matmul %33, %34, %cst_16 {dimension_numbers = #tpu.dot_dimension_numbers<[1], [0], [0], [1], [0, 0, 1, 1], [], []>} : vector<2x32xf32>, vector<32x32xf32>, vector<2x32xf32> -> vector<2x32xf32>
    %c0_17 = arith.constant 0 : index
    %c0_18 = arith.constant 0 : index
    %36 = vector.load %arg5[%c0_17, %c0_18] : memref<3x32xf32, #tpu.memory_space<vmem>>, vector<1x32xf32>
    %37 = vector.broadcast %36 : vector<1x32xf32> to vector<2x32xf32>
    %38 = arith.addf %35, %37 : vector<2x32xf32>
    %c1_19 = arith.constant 1 : index
    %c0_20 = arith.constant 0 : index
    %39 = vector.load %arg5[%c1_19, %c0_20] : memref<3x32xf32, #tpu.memory_space<vmem>>, vector<1x32xf32>
    %c2_21 = arith.constant 2 : index
    %c0_22 = arith.constant 0 : index
    %40 = vector.load %arg5[%c2_21, %c0_22] : memref<3x32xf32, #tpu.memory_space<vmem>>, vector<1x32xf32>
    %cst_23 = arith.constant dense<0.000000e+00> : vector<2xf32>
    %41 = vector.multi_reduction <add>, %38, %cst_23 [1] : vector<2x32xf32> to vector<2xf32>
    %42 = vector.shape_cast %41 : vector<2xf32> to vector<2x1xf32>
    %43 = arith.mulf %38, %38 : vector<2x32xf32>
    %cst_24 = arith.constant dense<0.000000e+00> : vector<2xf32>
    %44 = vector.multi_reduction <add>, %43, %cst_24 [1] : vector<2x32xf32> to vector<2xf32>
    %45 = vector.shape_cast %44 : vector<2xf32> to vector<2x1xf32>
    %cst_25 = arith.constant 3.125000e-02 : f32
    %46 = vector.broadcast %cst_25 : f32 to vector<2x1xf32>
    %47 = arith.mulf %42, %46 : vector<2x1xf32>
    %cst_26 = arith.constant 3.125000e-02 : f32
    %48 = vector.broadcast %cst_26 : f32 to vector<2x1xf32>
    %49 = arith.mulf %45, %48 : vector<2x1xf32>
    %50 = arith.mulf %47, %47 : vector<2x1xf32>
    %51 = arith.subf %49, %50 : vector<2x1xf32>
    %cst_27 = arith.constant 0.000000e+00 : f32
    %52 = vector.broadcast %cst_27 : f32 to vector<2x1xf32>
    %53 = arith.maximumf %51, %52 : vector<2x1xf32>
    %54 = vector.broadcast %47 : vector<2x1xf32> to vector<2x32xf32>
    %55 = arith.subf %38, %54 : vector<2x32xf32>
    %cst_28 = arith.constant 9.99999974E-6 : f32
    %56 = vector.broadcast %cst_28 : f32 to vector<2x1xf32>
    %57 = arith.addf %53, %56 : vector<2x1xf32>
    %58 = math.rsqrt %57 : vector<2x1xf32>
    %59 = vector.broadcast %58 : vector<2x1xf32> to vector<2x32xf32>
    %60 = arith.mulf %55, %59 : vector<2x32xf32>
    %61 = vector.broadcast %39 : vector<1x32xf32> to vector<2x32xf32>
    %62 = arith.mulf %60, %61 : vector<2x32xf32>
    %63 = vector.broadcast %40 : vector<1x32xf32> to vector<2x32xf32>
    %64 = arith.addf %62, %63 : vector<2x32xf32>
    %cst_29 = arith.constant 0.000000e+00 : f32
    %65 = vector.broadcast %cst_29 : f32 to vector<2x32xf32>
    %66 = arith.maximumf %64, %65 : vector<2x32xf32>
    %c0_30 = arith.constant 0 : index
    %c0_31 = arith.constant 0 : index
    %67 = vector.load %arg6[%c0_30, %c0_31] : memref<32x2xf32, #tpu.memory_space<vmem>>, vector<32x2xf32>
    %cst_32 = arith.constant dense<0.000000e+00> : vector<2x2xf32>
    %68 = tpu.matmul %66, %67, %cst_32 {dimension_numbers = #tpu.dot_dimension_numbers<[1], [0], [0], [1], [0, 0, 1, 1], [], []>} : vector<2x32xf32>, vector<32x2xf32>, vector<2x2xf32> -> vector<2x2xf32>
    %c0_33 = arith.constant 0 : index
    %c0_34 = arith.constant 0 : index
    %69 = vector.load %arg7[%c0_33, %c0_34] : memref<1x2xf32, #tpu.memory_space<vmem>>, vector<1x2xf32>
    %70 = vector.broadcast %69 : vector<1x2xf32> to vector<2x2xf32>
    %71 = arith.addf %68, %70 : vector<2x2xf32>
    %72 = math.tanh %71 : vector<2x2xf32>
    %c0_35 = arith.constant 0 : index
    %c0_36 = arith.constant 0 : index
    %73 = vector.load %arg8[%c0_35, %c0_36] : memref<2x2xf32, #tpu.memory_space<vmem>>, vector<2x2xf32>
    tpu.vector_store %arg8[%c0_35, %c0_36], %72 {strides = array<i32>} : memref<2x2xf32, #tpu.memory_space<vmem>>, vector<2x2xf32>,
    return
  }
  func.func @transform_0(%arg0: i32) -> (i32, i32) {
    %c0_i32 = arith.constant 0 : i32
    %c0_i32_0 = arith.constant 0 : i32
    return %arg0, %c0_i32 : i32, i32
  }
  func.func @transform_1(%arg0: i32) -> (i32, i32) {
    %c0_i32 = arith.constant 0 : i32
    %c0_i32_0 = arith.constant 0 : i32
    %c0_i32_1 = arith.constant 0 : i32
    return %c0_i32, %c0_i32_0 : i32, i32
  }
  func.func @transform_2(%arg0: i32) -> (i32, i32) {
    %c0_i32 = arith.constant 0 : i32
    %c0_i32_0 = arith.constant 0 : i32
    %c0_i32_1 = arith.constant 0 : i32
    return %c0_i32, %c0_i32_0 : i32, i32
  }
  func.func @transform_3(%arg0: i32) -> (i32, i32) {
    %c0_i32 = arith.constant 0 : i32
    %c0_i32_0 = arith.constant 0 : i32
    %c0_i32_1 = arith.constant 0 : i32
    return %c0_i32, %c0_i32_0 : i32, i32
  }
  func.func @transform_4(%arg0: i32) -> (i32, i32) {
    %c0_i32 = arith.constant 0 : i32
    %c0_i32_0 = arith.constant 0 : i32
    %c0_i32_1 = arith.constant 0 : i32
    return %c0_i32, %c0_i32_0 : i32, i32
  }
  func.func @transform_5(%arg0: i32) -> (i32, i32) {
    %c0_i32 = arith.constant 0 : i32
    %c0_i32_0 = arith.constant 0 : i32
    %c0_i32_1 = arith.constant 0 : i32
    return %c0_i32, %c0_i32_0 : i32, i32
  }
  func.func @transform_6(%arg0: i32) -> (i32, i32) {
    %c0_i32 = arith.constant 0 : i32
    %c0_i32_0 = arith.constant 0 : i32
    %c0_i32_1 = arith.constant 0 : i32
    return %c0_i32, %c0_i32_0 : i32, i32
  }
  func.func @transform_7(%arg0: i32) -> (i32, i32) {
    %c0_i32 = arith.constant 0 : i32
    %c0_i32_0 = arith.constant 0 : i32
    return %arg0, %c0_i32 : i32, i32
  }
}

</mosaic_0001>

<bundles_post_ra>
// kernel: tpu_custom_call.1
= control target key start
LH: loop header
LB: loop body
LE: loop exit
PB: predicated region body
PF: predicated region fallthrough
CT: control target
= control target key end

     0   :  { %12 = vsyncpa [#allocation3], 0  ;;  %s464_s0 = inlined_call_operand.vmem [shape: f32[2,16], index: 0, kind: input, shape index: {}]   ;;  %s465_s1 = inlined_call_operand.hbm [shape: f32[16,32], index: 1, kind: input, shape index: {}]   ;;  %s466_s2 = inlined_call_operand.hbm [shape: f32[3,32], index: 2, kind: input, shape index: {}]   ;;  %s467_s3 = inlined_call_operand.vmem [shape: f32[32,32], index: 3, kind: input, shape index: {}]   ;;  %s468_s4 = inlined_call_operand.hbm [shape: f32[3,32], index: 4, kind: input, shape index: {}]   ;;  %s469_s5 = inlined_call_operand.vmem [shape: f32[32,2], index: 5, kind: input, shape index: {}]   ;;  %s470_s6 = inlined_call_operand.vmem [shape: f32[1,2], index: 6, kind: input, shape index: {}]   ;;  %s471_s7 = inlined_call_operand.hbm [shape: f32[2,2], index: 7, kind: output, shape index: {}]  }
   0x1   :  { %13 = vsyncpa [#allocation6], 0  ;;  %s35_s26 = sshll.u32 %s466_s2, 4  ;;  %s36_s26 = int_to_ptr.hbm [resolvable:$true] %s35_s26 }
   0x2   :  { %14 = vsyncpa [#allocation4], 0  ;;  %s370_s27 = smov [#allocation5]   ;;  %s21_s8 = sshll.u32 %s465_s1, 4  ;;  %s22_s8 = int_to_ptr.hbm [resolvable:$true] %s21_s8 }
   0x3   :  { %s37_s28 = sshll.u32 %s370_s27, 4  ;;  %s371_s9 = smov [#allocation2]   ;;  %s38_s28 = int_to_ptr.vmem [resolvable:$true] %s37_s28 }
   0x4   :  { %40 = dma.hbm_to_vmem [thread:$0]  %s36_s26, 64, %s38_s28, [#allocation6]  }
   0x5   :  { %s23_s10 = sshll.u32 %s371_s9, 4  ;;  %s372_s11 = smov 128   ;;  %s24_s10 = int_to_ptr.vmem [resolvable:$true] %s23_s10 }
   0x6   :  { %s373_s12 = smov 8   ;;  %s48_s2 = sshll.u32 %s468_s4, 4  ;;  %s49_s2 = int_to_ptr.hbm [resolvable:$true] %s48_s2 }
   0x7   :  { %29 = dma.hbm_to_vmem [thread:$0]  %s22_s8, 256, %s24_s10, [#allocation3], %s372_s11, %s372_s11, %s373_s12  }
   0x8   :  { %s374_s15 = smov [#allocation7]  }
   0x9   :  { %s50_s16 = sshll.u32 %s374_s15, 4  ;;  %s51_s16 = int_to_ptr.vmem [resolvable:$true] %s50_s16 }
   0xa   :  { %53 = dma.hbm_to_vmem [thread:$0]  %s49_s2, 64, %s51_s16, [#allocation6]  }
   0xb   :  { %364 = dma.done.wait [#allocation3], 256  }
   0xc   :  { %365 = vsyncadd [#allocation3], 4294967040 }
   0xd   :  { %366 = dma.done.wait [#allocation6], 128  }
   0xe   :  { %367 = vsyncadd [#allocation6], 4294967168  ;;  %v72_v0 = vld [vmem:[#allocation2 + $0x8] sm:$0xff]  ;;  %v71_v1 = vld [vmem:[#allocation2] sm:$0xff]  ;;  %vm75_vm0 = vcmask 130048   ;;  %vm101_vm1 = vcmask 254976  }
   0xf   :  { %93 = vmatpush.msra.mxu0 %v72_v0  ;;  %v70_v2 = vld [vmem:[%s464_s0] sm:$0x3]  ;;  %v255_v3 = vld [vmem:[#allocation5] ss:$0 sm:$0xff]  ;;  %v135_v10 = vld [vmem:[%s467_s3 + $0x18] sm:$0xff]  ;;  %vm138_vm5 = vcmask 261120  }
  0x10   :  { %v134_v11 = vld [vmem:[%s467_s3 + $0x10] sm:$0xff]  ;;  %154 = vmatpush.msra.mxu1 %v135_v10  ;;  %v133_v12 = vld [vmem:[%s467_s3 + $0x8] sm:$0xff]  ;;  %v132_v13 = vld [vmem:[%s467_s3] sm:$0xff]  ;;  %s375_s9 = smov [#allocation8]   ;;  %s235_s13 = sshll.u32 %s471_s7, 4  ;;  %vm226_vm9 = vcmask 9216   ;;  %s236_s13 = int_to_ptr.hbm [resolvable:$true] %s235_s13 }
  0x11   :  { %94 = vmatpush.msra.mxu0 %v71_v1  ;;  %v256_v28 = vld [vmem:[#allocation5 + $0x1] ss:$0 sm:$0xff]  ;;  %v257_v31 = vld [vmem:[#allocation5 + $0x2] ss:$0 sm:$0xff]  ;;  %v258_v35 = vld [vmem:[#allocation7] ss:$0 sm:$0xff] }
  0x12   :  { %246 = vmatmul.msk.f32.vlgmr.msra.gmra.mxu0 %vm75_vm0, %v70_v2  ;;  %155 = vmatpush.msra.mxu1 %v134_v11  ;;  %v197_v42 = vld [vmem:[%s469_s5 + $0x18] sm:$0xff]  ;;  %v196_v43 = vld [vmem:[%s469_s5 + $0x10] sm:$0xff]  ;;  %v195_v44 = vld [vmem:[%s469_s5 + $0x8] sm:$0xff]  ;;  %s233_s10 = sshll.u32 %s375_s9, 4  ;;  %s234_s10 = int_to_ptr.vmem [resolvable:$true] %s233_s10 }
  0x13   :  { %217 = vmatpush.msra.mxu2 %v197_v42  ;;  %v194_v45 = vld [vmem:[%s469_s5] sm:$0xff]  ;;  %v259_v60 = vld [vmem:[#allocation7 + $0x1] ss:$0 sm:$0xff]  ;;  %v260_v63 = vld [vmem:[#allocation7 + $0x2] ss:$0 sm:$0xff] }
  0x14   :  { %156 = vmatpush.msra.mxu1 %v133_v12 }
  0x15   :  { %218 = vmatpush.msra.mxu2 %v196_v43 }
  0x16   :  { %157 = vmatpush.msra.mxu1 %v132_v13 }
  0x17   :  { %219 = vmatpush.msra.mxu2 %v195_v44 }
  0x19   :  { %220 = vmatpush.msra.mxu2 %v194_v45 }
  0x8f   :  { %v96_v4 = vpop.f32.mrf.mxu0 }
  0x90   :  { %v97_v5 = vadd.f32 %v255_v3, %v96_v4  ;;  %v261_v3 = vld [vmem:[%s470_s6] ss:$0 sm:$0xff] }
  0x92   :  { %v102_v6 = vsel %vm101_vm1, %v97_v5, 0.0  ;;  %v105_v7 = vmul.f32 %v97_v5, %v97_v5 }
  0x93   :  { %103 = vadd.xlane.f32.xlu0 %v102_v6 }
  0x94   :  { %v106_v8 = vsel %vm101_vm1, %v105_v7, 0.0 }
  0x9b   :  { %107 = vadd.xlane.f32.xlu0 %v106_v8 }
 0x106   :  { %v104_v9 = vpop.xlane.xlu0 %103 }
 0x107   :  { %v109_v14 = vmul.f32 0.03125, %v104_v9 }
 0x109   :  { %v111_v16 = vmul.f32 %v109_v14, %v109_v14  ;;  %v114_v27 = vsub.f32 %v97_v5, %v109_v14 }
 0x10e   :  { %v108_v15 = vpop.xlane.xlu0 %107 }
 0x10f   :  { %v110_v17 = vmul.f32 0.03125, %v108_v15 }
 0x111   :  { %v112_v18 = vsub.f32 %v110_v17, %v111_v16 }
 0x113   :  { %v113_v19 = vmax.f32 %v112_v18, 0.0 }
 0x115   :  { %v115_v20 = vadd.f32 1e-05, %v113_v19 }
 0x117   :  { %262 = vrsqrt.f32 %v115_v20  ;;  %vm122_vm3 = vweird.f32 %v115_v20 }
 0x11d   :  { %v263_v21 = vpop.eup %262 }
 0x11e   :  { %v117_v22 = vmul.f32 %v263_v21, %v115_v20  ;;  %vm123_vm2 = vweird.f32 %v263_v21 }
 0x11f   :  { %vm124_vm4 = vmor %vm122_vm3, %vm123_vm2 }
 0x120   :  { %v118_v23 = vmul.f32 %v263_v21, %v117_v22 }
 0x122   :  { %v119_v24 = vmul.f32 0.5, %v118_v23 }
 0x124   :  { %v120_v25 = vsub.f32 1.5, %v119_v24 }
 0x126   :  { %v121_v26 = vmul.f32 %v263_v21, %v120_v25 }
 0x128   :  { %v125_v29 = vsel %vm124_vm4, %v263_v21, %v121_v26 }
 0x129   :  { %v126_v30 = vmul.f32 %v125_v29, %v114_v27 }
 0x12b   :  { %v128_v32 = vmul.f32 %v256_v28, %v126_v30 }
 0x12d   :  { %v130_v33 = vadd.f32 %v257_v31, %v128_v32 }
 0x12f   :  { %v131_v34 = vmax.f32 %v130_v33, 0.0 }
 0x131   :  { %247 = vmatmul.msk.f32.vlgmr.msra.gmra.mxu1 %vm138_vm5, %v131_v34 }
 0x1ae   :  { %v159_v36 = vpop.f32.mrf.mxu1 }
 0x1af   :  { %v160_v37 = vadd.f32 %v258_v35, %v159_v36 }
 0x1b1   :  { %v164_v38 = vsel %vm101_vm1, %v160_v37, 0.0  ;;  %v167_v39 = vmul.f32 %v160_v37, %v160_v37 }
 0x1b2   :  { %165 = vadd.xlane.f32.xlu1 %v164_v38 }
 0x1b3   :  { %v168_v40 = vsel %vm101_vm1, %v167_v39, 0.0 }
 0x1ba   :  { %169 = vadd.xlane.f32.xlu1 %v168_v40 }
 0x225   :  { %v166_v41 = vpop.xlane.xlu1 %165 }
 0x226   :  { %v171_v46 = vmul.f32 0.03125, %v166_v41 }
 0x228   :  { %v173_v48 = vmul.f32 %v171_v46, %v171_v46  ;;  %v176_v59 = vsub.f32 %v160_v37, %v171_v46 }
 0x22d   :  { %v170_v47 = vpop.xlane.xlu1 %169 }
 0x22e   :  { %v172_v49 = vmul.f32 0.03125, %v170_v47 }
 0x230   :  { %v174_v50 = vsub.f32 %v172_v49, %v173_v48 }
 0x232   :  { %v175_v51 = vmax.f32 %v174_v50, 0.0 }
 0x234   :  { %v177_v52 = vadd.f32 1e-05, %v175_v51 }
 0x236   :  { %264 = vrsqrt.f32 %v177_v52  ;;  %vm184_vm7 = vweird.f32 %v177_v52 }
 0x23c   :  { %v265_v53 = vpop.eup %264 }
 0x23d   :  { %v179_v54 = vmul.f32 %v265_v53, %v177_v52  ;;  %vm185_vm6 = vweird.f32 %v265_v53 }
 0x23e   :  { %vm186_vm8 = vmor %vm184_vm7, %vm185_vm6 }
 0x23f   :  { %v180_v55 = vmul.f32 %v265_v53, %v179_v54 }
 0x241   :  { %v181_v56 = vmul.f32 0.5, %v180_v55 }
 0x243   :  { %v182_v57 = vsub.f32 1.5, %v181_v56 }
 0x245   :  { %v183_v58 = vmul.f32 %v265_v53, %v182_v57 }
 0x247   :  { %v187_v61 = vsel %vm186_vm8, %v265_v53, %v183_v58 }
 0x248   :  { %v188_v62 = vmul.f32 %v187_v61, %v176_v59 }
 0x24a   :  { %v190_v0 = vmul.f32 %v259_v60, %v188_v62 }
 0x24c   :  { %v192_v1 = vadd.f32 %v260_v63, %v190_v0 }
 0x24e   :  { %v193_v2 = vmax.f32 %v192_v1, 0.0 }
 0x250   :  { %248 = vmatmul.msk.f32.vlgmr.msra.gmra.mxu2 %vm138_vm5, %v193_v2 }
 0x2d3   :  { %v222_v4 = vpop.f32.mrf.mxu2 }
 0x2d4   :  { %v223_v5 = vadd.f32 %v261_v3, %v222_v4 }
 0x2d6   :  { %266 = vtanh.f32 %v223_v5 }
 0x2dc   :  { %v267_v6 = vpop.eup %266 }
 0x2dd   :  { %227 = vst.msk [vmem:[#allocation8] sm:$0x3] %vm226_vm9, %v267_v6 }
 0x2de   :  { %238 = dma.vmem_to_hbm [thread:$0]  %s234_s10, 32, %s236_s13, [#allocation4]  }
 0x2df   :  { %368 = dma.done.wait [#allocation4], 32  }
 0x2e0   :  { %369 = vsyncadd [#allocation4], 4294967264 }
 0x2e1   :  { %243 = vsyncpa [#allocation3], 1 }
 0x2e2   :  { %244 = vsyncpa [#allocation6], 1 }
 0x2e3   :  { %245 = vsyncpa [#allocation4], 1 }

</bundles_post_ra>
